<compile_context>
chip_gen: v7x
topology: tpu7x:2x2x1
jax: 0.10.0
libtpu: 0.0.40
codegen_flags: <defaults>
</compile_context>

<pallas_src>
import numpy as np
import jax
import jax.numpy as jnp
from jax.experimental import pallas as pl
from jax.experimental.pallas import tpu as pltpu


def _convt_relu_kernel(x_ref, w_ref, b_ref, o_ref):
    # x_ref : (Cpad, Mpad) im2col patch matrix (all groups stacked)
    # w_ref : (R, Cpad)    block-diagonal grouped weight, R = groups*Cog = 8
    # b_ref : (R, 1)       bias column
    # o_ref : (R, Mpad)    lane-dense output
    acc = jnp.dot(w_ref[...], x_ref[...], preferred_element_type=jnp.float32)
    acc = acc + b_ref[...]                      # (R, 1) broadcast over lanes
    o_ref[...] = jnp.maximum(acc, 0.0).astype(o_ref.dtype)


def conv_transpose2d_relu(x_nchw, weight, bias, groups):
    """Grouped ConvTranspose2d (stride=1, padding=0) + ReLU, PyTorch semantics.

    x_nchw: (N, Cin, H, W); weight: (Cin, Cout//groups, K, K); bias: (Cout,)
    returns (N, Cout, H+K-1, W+K-1)
    """
    N, Cin, H, W = x_nchw.shape
    Cig = Cin // groups
    Cog = weight.shape[1]
    K = weight.shape[2]
    Ho, Wo = H + K - 1, W + K - 1
    KKC = Cig * K * K                    # per-group contraction length, (ci, kh, kw) order
    R = groups * Cog                     # fused output rows (8 -> one f32 sublane tile)
    Cbd = groups * KKC                   # fused (block-diagonal) contraction length
    Cpad = ((Cbd + 7) // 8) * 8          # pad contraction to full sublane tiles (36 -> 40)
    M = N * Ho * Wo
    Mpad = ((M + 127) // 128) * 128      # lane-dense, unmasked stores

    # ---- wrapper-side layout plumbing (XLA) ----
    # (N, Cin, H, W) -> (G, Cig, N, H, W): one small transpose BEFORE the K*K blowup.
    xg = jnp.transpose(x_nchw.reshape(N, groups, Cig, H, W), (1, 2, 0, 3, 4))
    xpad = jnp.pad(xg, ((0, 0), (0, 0), (0, 0), (K - 1, K - 1), (K - 1, K - 1)))
    # Stack the K*K shifted views right after Cig -> (G, Cig, K*K, N, Ho, Wo);
    # the reshape to the matmul layout below is then contiguous (no 6-D transpose).
    patches = jnp.stack(
        [xpad[:, :, :, kh:kh + Ho, kw:kw + Wo] for kh in range(K) for kw in range(K)],
        axis=2)
    x_bd = patches.reshape(Cbd, M)
    x_bd = jnp.pad(x_bd, ((0, Cpad - Cbd), (0, Mpad - M)))

    # Weights: (Cin, Cog, K, K) -> per group, spatially flipped (transposed conv ==
    # full correlation with flipped kernel), contraction order (ci, kh, kw) matching
    # x_bd; groups placed on the block diagonal of one (R, Cpad) matrix.
    wf = weight.reshape(groups, Cig, Cog, K, K)[:, :, :, ::-1, ::-1]
    w_mat = jnp.transpose(wf, (0, 2, 1, 3, 4)).reshape(groups, Cog, KKC)
    w_bd = jnp.zeros((R, Cpad), weight.dtype)
    for g in range(groups):
        w_bd = w_bd.at[g * Cog:(g + 1) * Cog, g * KKC:(g + 1) * KKC].set(w_mat[g])
    b_col = bias.reshape(R, 1)

    out_bd = pl.pallas_call(
        _convt_relu_kernel,
        out_shape=jax.ShapeDtypeStruct((R, Mpad), x_nchw.dtype),
        in_specs=[
            pl.BlockSpec(memory_space=pltpu.MemorySpace.VMEM),
            pl.BlockSpec(memory_space=pltpu.MemorySpace.VMEM),
            pl.BlockSpec(memory_space=pltpu.MemorySpace.VMEM),
        ],
        out_specs=pl.BlockSpec(memory_space=pltpu.MemorySpace.VMEM),
    )(x_bd, w_bd, b_col)

    # Slice off the Mpad padding columns (they carry bias+ReLU garbage), back to NCHW.
    out = out_bd[:, :M].reshape(groups, Cog, N, Ho, Wo)
    return jnp.transpose(out, (2, 0, 1, 3, 4)).reshape(N, groups * Cog, Ho, Wo)


class Model:
    """Pallas port of the PyTorch module: permute(0,3,2,1) -> ConvTranspose2d -> ReLU."""

    def __init__(self, in_channels=4, out_channels=8, kernel_size=3, groups=2, key=None):
        # TODO(synk): the original module declared ConvTranspose2d(3, 8, 3, groups=2),
        # which PyTorch rejects (in_channels not divisible by groups); we use 4 input
        # channels so the grouped transposed conv is well defined.
        k1, k2 = jax.random.split(key)
        fan = (in_channels // groups) * kernel_size * kernel_size
        bound = 1.0 / float(np.sqrt(fan))
        self.weight = jax.random.uniform(
            k1, (in_channels, out_channels // groups, kernel_size, kernel_size),
            jnp.float32, -bound, bound)
        self.bias = jax.random.uniform(k2, (out_channels,), jnp.float32, -bound, bound)
        self.groups = groups

    def __call__(self, x_in):
        # x_in: (N, D1, D2, C); permute(0, 3, 2, 1) -> NCHW (N, C, D2, D1)
        x = jnp.transpose(x_in, (0, 3, 2, 1))
        return conv_transpose2d_relu(x, self.weight, self.bias, self.groups)


def _ref_conv_transpose_relu(x, w, b, groups):
    """Naive numpy reference of grouped ConvTranspose2d(stride=1, pad=0) + ReLU."""
    N, Cin, H, W = x.shape
    Cig = Cin // groups
    Cog = w.shape[1]
    K = w.shape[2]
    out = np.zeros((N, groups * Cog, H + K - 1, W + K - 1), np.float32)
    for n in range(N):
        for g in range(groups):
            for ci in range(Cig):
                for co in range(Cog):
                    for i in range(H):
                        for j in range(W):
                            out[n, g * Cog + co, i:i + K, j:j + K] += (
                                x[n, g * Cig + ci, i, j] * w[g * Cig + ci, co])
    out += b[None, :, None, None]
    return np.maximum(out, 0.0)


if __name__ == "__main__":
    key = jax.random.PRNGKey(0)
    kx, kp = jax.random.split(key)
    N, D1, D2, C = 2, 16, 16, 4
    x_in = jax.random.normal(kx, (N, D1, D2, C), jnp.float32)

    model = Model(in_channels=C, out_channels=8, kernel_size=3, groups=2, key=kp)
    fwd = jax.jit(model.__call__)
    out = jax.block_until_ready(fwd(x_in))

    # correctness check against a naive numpy reference
    x_nchw = np.transpose(np.asarray(x_in), (0, 3, 2, 1))
    ref = _ref_conv_transpose_relu(
        x_nchw, np.asarray(model.weight), np.asarray(model.bias), model.groups)
    assert out.shape == ref.shape, (out.shape, ref.shape)
    np.testing.assert_allclose(np.asarray(out), ref, rtol=1e-4, atol=1e-4)

    print("KERNEL_OK")
</pallas_src>

<mosaic_0001>
module attributes {stable_mosaic.version = 11 : i64} {
  func.func @_convt_relu_kernel(%arg0: memref<40x768xf32, #tpu.memory_space<vmem>>, %arg1: memref<8x40xf32, #tpu.memory_space<vmem>>, %arg2: memref<8x1xf32, #tpu.memory_space<vmem>>, %arg3: memref<8x768xf32, #tpu.memory_space<vmem>>) attributes {dimension_semantics = [], scalar_prefetch = 0 : i64, scratch_operands = 0 : i64, tpu.core_type = #tpu.core_type<tc>} {
    %c0 = arith.constant 0 : index
    %c0_0 = arith.constant 0 : index
    %0 = vector.load %arg1[%c0, %c0_0] : memref<8x40xf32, #tpu.memory_space<vmem>>, vector<8x40xf32>
    %c0_1 = arith.constant 0 : index
    %c0_2 = arith.constant 0 : index
    %1 = vector.load %arg0[%c0_1, %c0_2] : memref<40x768xf32, #tpu.memory_space<vmem>>, vector<40x768xf32>
    %cst = arith.constant dense<0.000000e+00> : vector<8x768xf32>
    %2 = tpu.matmul %0, %1, %cst {dimension_numbers = #tpu.dot_dimension_numbers<[1], [0], [0], [1], [0, 0, 1, 1], [], []>} : vector<8x40xf32>, vector<40x768xf32>, vector<8x768xf32> -> vector<8x768xf32>
    %c0_3 = arith.constant 0 : index
    %c0_4 = arith.constant 0 : index
    %3 = vector.load %arg2[%c0_3, %c0_4] : memref<8x1xf32, #tpu.memory_space<vmem>>, vector<8x1xf32>
    %4 = vector.broadcast %3 : vector<8x1xf32> to vector<8x768xf32>
    %5 = arith.addf %2, %4 : vector<8x768xf32>
    %cst_5 = arith.constant 0.000000e+00 : f32
    %6 = vector.broadcast %cst_5 : f32 to vector<8x768xf32>
    %7 = arith.maximumf %5, %6 : vector<8x768xf32>
    %c0_6 = arith.constant 0 : index
    %c0_7 = arith.constant 0 : index
    %8 = vector.load %arg3[%c0_6, %c0_7] : memref<8x768xf32, #tpu.memory_space<vmem>>, vector<8x768xf32>
    tpu.vector_store %arg3[%c0_6, %c0_7], %7 {strides = array<i32>} : memref<8x768xf32, #tpu.memory_space<vmem>>, vector<8x768xf32>,
    return
  }
}

</mosaic_0001>

<bundles_post_ra>
// kernel: a_call__.1
= control target key start
LH: loop header
LB: loop body
LE: loop exit
PB: predicated region body
PF: predicated region fallthrough
CT: control target
= control target key end

     0   :  { %v314_v3 = vmov 0.0   ;;  %v315_v8 = vmov 0   ;;  %vm51_vm0 = vcmask 326656   ;;  %s453_s0 = inlined_call_operand.vmem [shape: f32[40,768], index: 0, kind: input, shape index: {}]   ;;  %s454_s1 = inlined_call_operand.vmem [shape: f32[8,40], index: 1, kind: input, shape index: {}]   ;;  %s455_s2 = inlined_call_operand.vmem [shape: f32[8,1], index: 2, kind: input, shape index: {}]   ;;  %s456_s3 = inlined_call_operand.vmem [shape: f32[8,768], index: 3, kind: output, shape index: {}]  }
   0x1   :  { %v16_v0 = vld [vmem:[%s453_s0 + $0x8] sm:$0xff]  ;;  %v22_v1 = vld [vmem:[%s453_s0 + $0x38] sm:$0xff]  ;;  %v15_v2 = vld [vmem:[%s453_s0] sm:$0xff]  ;;  %119 = vmatprep.mubr.f32.mxu0 %v314_v3  ;;  %190 = vmatprep.mubr.f32.mxu1 %v314_v3 }
   0x2   :  { %v287_v4 = vpack.c.bf16 %v22_v1, %v16_v0  ;;  %v21_v5 = vld [vmem:[%s453_s0 + $0x30] sm:$0xff]  ;;  %v28_v6 = vld [vmem:[%s453_s0 + $0x68] sm:$0xff]  ;;  %v34_v7 = vld [vmem:[%s453_s0 + $0x98] sm:$0xff]  ;;  %313 = vset.pattern.permute.xlu0 %v315_v8 }
   0x3   :  { %v289_v9 = vpack.c.bf16 %v21_v5, %v15_v2  ;;  %v291_v10 = vpack.c.bf16 %v34_v7, %v28_v6  ;;  %v27_v11 = vld [vmem:[%s453_s0 + $0x60] sm:$0xff]  ;;  %v33_v12 = vld [vmem:[%s453_s0 + $0x90] sm:$0xff]  ;;  %v18_v13 = vld [vmem:[%s453_s0 + $0x18] sm:$0xff] }
   0x4   :  { %288 = vmatprep.subr.bf16.mxu0 %v287_v4  ;;  %v24_v14 = vld [vmem:[%s453_s0 + $0x48] sm:$0xff]  ;;  %v293_v15 = vpack.c.bf16 %v33_v12, %v27_v11  ;;  %v17_v17 = vld [vmem:[%s453_s0 + $0x10] sm:$0xff]  ;;  %v23_v18 = vld [vmem:[%s453_s0 + $0x40] sm:$0xff] }
   0x5   :  { %290 = vmatpush1.bf16.msra.mxu0 %v289_v9  ;;  %v295_v16 = vpack.c.bf16 %v24_v14, %v18_v13  ;;  %v40_v19 = vld [vmem:[%s453_s0 + $0xc8] sm:$0xff]  ;;  %v297_v20 = vpack.c.bf16 %v23_v18, %v17_v17  ;;  %v26_v22 = vld [vmem:[%s453_s0 + $0x58] sm:$0xff]  ;;  %v19_v23 = vld [vmem:[%s453_s0 + $0x20] sm:$0xff] }
   0x6   :  { %292 = vmatprep.subr.bf16.mxu0 %v291_v10  ;;  %v20_v21 = vld [vmem:[%s453_s0 + $0x28] sm:$0xff]  ;;  %v30_v24 = vld [vmem:[%s453_s0 + $0x78] sm:$0xff]  ;;  %v25_v26 = vld [vmem:[%s453_s0 + $0x50] sm:$0xff] }
   0x7   :  { %296 = vmatprep.subr.bf16.mxu1 %v295_v16  ;;  %v36_v25 = vld [vmem:[%s453_s0 + $0xa8] sm:$0xff]  ;;  %v29_v28 = vld [vmem:[%s453_s0 + $0x70] sm:$0xff]  ;;  %v35_v29 = vld [vmem:[%s453_s0 + $0xa0] sm:$0xff]  ;;  %v303_v34 = vpack.c.bf16 %v26_v22, %v20_v21  ;;  %v305_v37 = vpack.c.bf16 %v25_v26, %v19_v23 }
   0x8   :  { %298 = vmatpush1.bf16.msra.mxu1 %v297_v20  ;;  %v299_v27 = vpack.c.bf16 %v36_v25, %v30_v24  ;;  %v301_v30 = vpack.c.bf16 %v35_v29, %v29_v28  ;;  %v32_v31 = vld [vmem:[%s453_s0 + $0x88] sm:$0xff]  ;;  %v38_v32 = vld [vmem:[%s453_s0 + $0xb8] sm:$0xff]  ;;  %v39_v33 = vld [vmem:[%s453_s0 + $0xc0] sm:$0xff] }
   0x9   :  { %294 = vmatpush1.bf16.msra.mxu0 %v293_v15  ;;  %v42_v35 = vld [vmem:[%s453_s0 + $0xd8] sm:$0xff]  ;;  %v14_v36 = vld [vmem:[%s454_s1] sm:$0xff]  ;;  %v307_v39 = vpack.c.bf16 %v38_v32, %v32_v31  ;;  %v37_v41 = vld [vmem:[%s453_s0 + $0xb0] sm:$0xff] }
   0xa   :  { %63 = vmatprep.subr.mxu0 %v40_v19  ;;  %300 = vmatprep.subr.bf16.mxu1 %v299_v27  ;;  %v45_v38 = vld [vmem:[%s455_s2] sm:$0xff]  ;;  %v41_v42 = vld [vmem:[%s453_s0 + $0xd0] sm:$0xff]  ;;  %v44_v44 = vld [vmem:[%s453_s0 + $0xe8] sm:$0xff] }
   0xb   :  { %v31_v40 = vld [vmem:[%s453_s0 + $0x80] sm:$0xff]  ;;  %48 = vperm.xlu0 %313, %v45_v38  }
   0xc   :  { %302 = vmatpush1.bf16.msra.mxu1 %v301_v30  ;;  %v309_v43 = vpack.c.bf16 %v37_v41, %v31_v40  ;;  %v43_v45 = vld [vmem:[%s453_s0 + $0xe0] sm:$0xff] }
   0xd   :  { %64 = vmatpush1.msra.mxu0 %v39_v33  ;;  %134 = vmatprep.subr.mxu1 %v42_v35 }
   0xe   :  { %284 = vmatmul.mubr.msk.f32.vlgmr.msra.gmra.mrb[0].mxu0 %vm51_vm0, %v14_v36  ;;  %304 = vmatprep.subr.bf16.mxu0 %v303_v34 }
   0xf   :  { %306 = vmatpush1.bf16.msra.mxu0 %v305_v37  ;;  %261 = vmatprep.mubr.f32.mxu0 %v314_v3 }
  0x10   :  { %308 = vmatprep.subr.bf16.mxu0 %v307_v39  ;;  %135 = vmatpush1.msra.mxu1 %v41_v42 }
  0x11   :  { %285 = vmatmul.mubr.msk.f32.vlgmr.msra.gmra.mrb[0].mxu1 %vm51_vm0, %v14_v36 }
  0x13   :  { %310 = vmatpush1.bf16.msra.mxu0 %v309_v43 }
  0x14   :  { %205 = vmatprep.subr.mxu0 %v44_v44 }
  0x17   :  { %206 = vmatpush1.msra.mxu0 %v43_v45 }
  0x18   :  { %286 = vmatmul.mubr.msk.f32.vlgmr.msra.gmra.mrb[2].mxu0 %vm51_vm0, %v14_v36 }
  0x8a   :  { %v49_v46 = vpop.permute.xlu0 %48 }
  0xe1   :  { %v121_v47 = vpop.f32.mrb[0].mxu0 }
  0xe2   :  { %v122_v48 = vadd.f32 %v121_v47, %v49_v46  ;;  %v123_v49 = vpop.f32.mrb[1].mxu0 }
  0xe3   :  { %v124_v50 = vadd.f32 %v123_v49, %v49_v46 }
  0xe4   :  { %v268_v51 = vmax.f32 %v122_v48, 0.0  ;;  %v192_v52 = vpop.f32.mrb[0].mxu1 }
  0xe5   :  { %v269_v53 = vmax.f32 %v124_v50, 0.0  ;;  %v193_v54 = vadd.f32 %v192_v52, %v49_v46  ;;  %v194_v55 = vpop.f32.mrb[1].mxu1 }
  0xe6   :  { %274 = vst [vmem:[%s456_s3] sm:$0xff] %v268_v51  ;;  %v195_v56 = vadd.f32 %v194_v55, %v49_v46 }
  0xe7   :  { %275 = vst [vmem:[%s456_s3 + $0x8] sm:$0xff] %v269_v53  ;;  %v270_v57 = vmax.f32 %v193_v54, 0.0 }
  0xe8   :  { %v271_v58 = vmax.f32 %v195_v56, 0.0 }
  0xe9   :  { %276 = vst [vmem:[%s456_s3 + $0x10] sm:$0xff] %v270_v57 }
  0xea   :  { %277 = vst [vmem:[%s456_s3 + $0x18] sm:$0xff] %v271_v58 }
  0xeb   :  { %v263_v59 = vpop.f32.mrb[2].mxu0 }
  0xec   :  { %v264_v60 = vadd.f32 %v263_v59, %v49_v46  ;;  %v265_v61 = vpop.f32.mrb[3].mxu0 }
  0xed   :  { %v266_v62 = vadd.f32 %v265_v61, %v49_v46 }
  0xee   :  { %v272_v63 = vmax.f32 %v264_v60, 0.0 }
  0xef   :  { %v273_v0 = vmax.f32 %v266_v62, 0.0 }
  0xf0   :  { %278 = vst [vmem:[%s456_s3 + $0x20] sm:$0xff] %v272_v63 }
  0xf1   :  { %279 = vst [vmem:[%s456_s3 + $0x28] sm:$0xff] %v273_v0 }

</bundles_post_ra>
